<compile_context>
chip_gen: v7x
topology: tpu7x:2x2x1
jax: 0.10.0
libtpu: 0.0.40
codegen_flags: <defaults>
</compile_context>

<pallas_src>
import math

import jax
import jax.numpy as jnp
from jax.experimental import pallas as pl
from jax.experimental.pallas import tpu as pltpu


def rprelu_kernel(x_ref, p_ref, o_ref):
    x = x_ref[...]                     # (TR, TW)
    p = p_ref[...]                     # (3, TW): [move1; alpha; move2]
    m1 = p[0:1, :]
    a = p[1:2, :]
    m2 = p[2:3, :]
    y = x - m1
    o_ref[...] = (jnp.where(y >= 0, y, a * y) + m2).astype(o_ref.dtype)


def _tpu_defaults():
    """Per-generation (target_block_bytes, vmem_limit_bytes)."""
    try:
        cap = pltpu.get_tpu_info().vmem_capacity_bytes
    except Exception:
        cap = 128 * 1024 * 1024
    if cap <= 64 * 1024 * 1024:
        # v7x-class: 64 MiB physical VMEM, ~3.2 TB/s HBM -> bigger blocks.
        return 6 * 1024 * 1024, 40 * 1024 * 1024
    # v5e / v6e (128 MiB physical VMEM).
    return 4 * 1024 * 1024, 32 * 1024 * 1024


def _choose_fold(rows, H):
    """Rows to fold into one lane-dense row.  k*H is a multiple of 128."""
    k0 = 1 if H % 128 == 0 else 128 // math.gcd(H, 128)
    # Widen toward ~512 lanes; wider rows reduce per-row vld/vst bookkeeping.
    m_target = max(1, 512 // (k0 * H))
    if rows > 0 and rows % k0 == 0:
        # Prefer a fold that divides rows exactly -> no leftover, no copies.
        q = rows // k0
        m = m_target
        while m > 1 and q % m != 0:
            m -= 1
        return k0 * m
    return k0 * m_target


def _packed_call(x2d, params_w, tbb, vmem_limit, itemsize, dtype):
    """Run the lane-dense (rows_p, W) path with a 2-D row x width grid."""
    rows_p, W = x2d.shape
    row_align = max(8, 32 // itemsize)        # 8 rows f32, 16 bf16, 32 int8

    # Width tile: full W when it fits, else a multiple of 128 lanes.
    if W * itemsize * row_align <= tbb:
        tw = W
    else:
        tw = max(128, (tbb // (itemsize * row_align)) // 128 * 128)
        tw = min(tw, W)

    # Row tile: multiple of the sublane packing, ~tbb bytes per block.
    tr = (tbb // (tw * itemsize)) // row_align * row_align
    tr = max(row_align, tr)
    if tr >= rows_p:
        tr = rows_p                           # full-extent block is always legal

    grid = (pl.cdiv(rows_p, tr), pl.cdiv(W, tw))
    return pl.pallas_call(
        rprelu_kernel,
        out_shape=jax.ShapeDtypeStruct((rows_p, W), dtype),
        grid=grid,
        in_specs=[
            pl.BlockSpec((tr, tw), lambda i, j: (i, j)),
            pl.BlockSpec((3, tw), lambda i, j: (0, j)),   # params stay resident
        ],
        out_specs=pl.BlockSpec((tr, tw), lambda i, j: (i, j)),
        compiler_params=pltpu.CompilerParams(
            # TODO(synk): if "parallel" does not shard the grid across v7x's two
            # TensorCores, switch to pltpu.CORE_PARALLEL on the row axis.
            dimension_semantics=("parallel", "parallel"),
            vmem_limit_bytes=vmem_limit,
        ),
    )(x2d, params_w)


def rprelu(x, move1, alpha, move2, *, target_block_bytes=None):
    """x: (..., H); move1/alpha/move2: (H,). Returns same shape/dtype as x."""
    orig_shape = x.shape
    H = orig_shape[-1]
    rows = math.prod(orig_shape[:-1]) if len(orig_shape) > 1 else 1
    dtype = x.dtype
    itemsize = jnp.dtype(dtype).itemsize

    tbb_default, vmem_limit = _tpu_defaults()
    tbb = tbb_default if target_block_bytes is None else target_block_bytes
    # Blocks must fit the VMEM limit we request (in + out, double-buffered = 4x).
    tbb = max(8 * 128 * itemsize, min(tbb, (vmem_limit - (4 << 20)) // 4))

    x2 = x.reshape(rows, H)
    k = _choose_fold(rows, H)
    rows_main = (rows // k) * k
    leftover = rows - rows_main

    pieces = []

    if rows_main > 0:
        W = k * H
        rows_p = rows_main // k
        x_main = x2 if leftover == 0 else x2[:rows_main]
        x_main = x_main.reshape(rows_p, W)          # free (contiguous) reshape
        params_w = jnp.stack(
            [jnp.tile(move1, k), jnp.tile(alpha, k), jnp.tile(move2, k)], axis=0
        )
        out_main = _packed_call(x_main, params_w, tbb, vmem_limit, itemsize, dtype)
        pieces.append(out_main.reshape(rows_main, H))

    if leftover > 0:
        # Tiny (< k rows) epilogue: one full-extent block, masked stores are fine.
        x_tail = x2[rows_main:]
        params_h = jnp.stack([move1, alpha, move2], axis=0)
        out_tail = pl.pallas_call(
            rprelu_kernel,
            out_shape=jax.ShapeDtypeStruct((leftover, H), dtype),
            grid=(1,),
            in_specs=[
                pl.BlockSpec((leftover, H), lambda i: (0, 0)),
                pl.BlockSpec((3, H), lambda i: (0, 0)),
            ],
            out_specs=pl.BlockSpec((leftover, H), lambda i: (0, 0)),
        )(x_tail, params_h)
        pieces.append(out_tail)

    out2 = pieces[0] if len(pieces) == 1 else jnp.concatenate(pieces, axis=0)
    return out2.reshape(orig_shape)


def rprelu_ref(x, move1, alpha, move2):
    y = x - move1
    return jnp.where(y >= 0, y, alpha * y) + move2


if __name__ == "__main__":
    key = jax.random.PRNGKey(0)
    kx, k1, k2, k3, kx2, kx3 = jax.random.split(key, 6)

    # Case 1: module-implied shape (batch=2, seq=8, hidden=32) -> lane packing
    # to W = 512 with zero leftover (16 rows fold into one 512-lane row).
    B, S, H = 2, 8, 32
    x = jax.random.normal(kx, (B, S, H), dtype=jnp.float32)
    move1 = 0.1 * jax.random.normal(k1, (H,), dtype=jnp.float32)
    alpha = jnp.full((H,), 0.25, dtype=jnp.float32) + 0.05 * jax.random.normal(
        k2, (H,), dtype=jnp.float32
    )
    move2 = 0.1 * jax.random.normal(k3, (H,), dtype=jnp.float32)

    out = rprelu(x, move1, alpha, move2)
    jax.block_until_ready(out)
    ref = rprelu_ref(x, move1, alpha, move2)
    assert out.shape == (B, S, H)
    assert jnp.allclose(out, ref, atol=1e-6, rtol=1e-6)

    # Case 2: H multiple of 128 with a small block target to exercise the
    # multi-step tiled (double-buffered) path, including a padded tail block.
    B2, S2, H2 = 2, 50, 128
    x2 = jax.random.normal(kx2, (B2, S2, H2), dtype=jnp.float32)
    m1b = 0.1 * jax.random.normal(k1, (H2,), dtype=jnp.float32)
    alb = jnp.full((H2,), 0.25, dtype=jnp.float32)
    m2b = 0.1 * jax.random.normal(k3, (H2,), dtype=jnp.float32)

    out2 = rprelu(x2, m1b, alb, m2b, target_block_bytes=32 * 1024)
    jax.block_until_ready(out2)
    ref2 = rprelu_ref(x2, m1b, alb, m2b)
    assert out2.shape == (B2, S2, H2)
    assert jnp.allclose(out2, ref2, atol=1e-6, rtol=1e-6)

    # Case 3: row count not a multiple of the fold -> packed prefix + tiny
    # leftover epilogue call (never falls back to a sub-128-lane main path).
    B3, S3 = 3, 7  # rows = 21, fold k = 16 -> 16 packed rows + 5 leftover
    x3 = jax.random.normal(kx3, (B3, S3, H), dtype=jnp.float32)
    out3 = rprelu(x3, move1, alpha, move2)
    jax.block_until_ready(out3)
    ref3 = rprelu_ref(x3, move1, alpha, move2)
    assert out3.shape == (B3, S3, H)
    assert jnp.allclose(out3, ref3, atol=1e-6, rtol=1e-6)

    print("KERNEL_OK")
</pallas_src>

<mosaic_0001>
module attributes {stable_mosaic.version = 11 : i64} {
  func.func @rprelu_kernel(%arg0: i32, %arg1: i32, %arg2: memref<1x512xf32, #tpu.memory_space<vmem>>, %arg3: memref<3x512xf32, #tpu.memory_space<vmem>>, %arg4: memref<1x512xf32, #tpu.memory_space<vmem>>) attributes {dimension_semantics = [#tpu.dimension_semantics<parallel>, #tpu.dimension_semantics<parallel>], iteration_bounds = array<i64: 1, 1>, scalar_prefetch = 0 : i64, scratch_operands = 0 : i64, tpu.core_type = #tpu.core_type<tc>, window_params = [{transform_indices = @transform_0, window_bounds = array<i64: 1, 512>}, {transform_indices = @transform_1, window_bounds = array<i64: 3, 512>}, {transform_indices = @transform_2, window_bounds = array<i64: 1, 512>}]} {
    %c0 = arith.constant 0 : index
    %c0_0 = arith.constant 0 : index
    %0 = vector.load %arg2[%c0, %c0_0] : memref<1x512xf32, #tpu.memory_space<vmem>>, vector<1x512xf32>
    %c0_1 = arith.constant 0 : index
    %c0_2 = arith.constant 0 : index
    %1 = vector.load %arg3[%c0_1, %c0_2] : memref<3x512xf32, #tpu.memory_space<vmem>>, vector<3x512xf32>
    %2 = vector.extract_strided_slice %1 {offsets = [0, 0], sizes = [1, 512], strides = [1, 1]} : vector<3x512xf32> to vector<1x512xf32>
    %3 = vector.extract_strided_slice %1 {offsets = [1, 0], sizes = [1, 512], strides = [1, 1]} : vector<3x512xf32> to vector<1x512xf32>
    %4 = vector.extract_strided_slice %1 {offsets = [2, 0], sizes = [1, 512], strides = [1, 1]} : vector<3x512xf32> to vector<1x512xf32>
    %5 = arith.subf %0, %2 : vector<1x512xf32>
    %cst = arith.constant 0.000000e+00 : f32
    %6 = vector.broadcast %cst : f32 to vector<1x512xf32>
    %7 = arith.cmpf oge, %5, %6 : vector<1x512xf32>
    %8 = arith.mulf %3, %5 : vector<1x512xf32>
    %9 = arith.select %7, %5, %8 : vector<1x512xi1>, vector<1x512xf32>
    %10 = arith.addf %9, %4 : vector<1x512xf32>
    %c0_3 = arith.constant 0 : index
    %c0_4 = arith.constant 0 : index
    %11 = vector.load %arg4[%c0_3, %c0_4] : memref<1x512xf32, #tpu.memory_space<vmem>>, vector<1x512xf32>
    tpu.vector_store %arg4[%c0_3, %c0_4], %10 {strides = array<i32>} : memref<1x512xf32, #tpu.memory_space<vmem>>, vector<1x512xf32>,
    return
  }
  func.func @transform_0(%arg0: i32, %arg1: i32) -> (i32, i32) {
    %c0_i32 = arith.constant 0 : i32
    return %arg0, %arg1 : i32, i32
  }
  func.func @transform_1(%arg0: i32, %arg1: i32) -> (i32, i32) {
    %c0_i32 = arith.constant 0 : i32
    %c0_i32_0 = arith.constant 0 : i32
    return %c0_i32, %arg1 : i32, i32
  }
  func.func @transform_2(%arg0: i32, %arg1: i32) -> (i32, i32) {
    %c0_i32 = arith.constant 0 : i32
    return %arg0, %arg1 : i32, i32
  }
}

</mosaic_0001>

<bundles_post_ra>
// kernel: tpu_custom_call.1
= control target key start
LH: loop header
LB: loop body
LE: loop exit
PB: predicated region body
PF: predicated region fallthrough
CT: control target
= control target key end

     0   :  { %7 = vsyncpa [#allocation3], 0  ;;  %s270_s0 = inlined_call_operand.hbm [shape: f32[1,512], index: 0, kind: input, shape index: {}]   ;;  %s271_s1 = inlined_call_operand.hbm [shape: f32[3,512], index: 1, kind: input, shape index: {}]   ;;  %s272_s2 = inlined_call_operand.hbm [shape: f32[1,512], index: 2, kind: output, shape index: {}]  }
   0x1   :  { %8 = vsyncpa [#allocation6], 0 }
   0x2   :  { %9 = vsyncpa [#allocation4], 0  ;;  %s213_s9 = smov [#allocation2]   ;;  %s214_s11 = smov [#allocation5]  }
   0x3   :  { %s16_s10 = sshll.u32 %s213_s9, 4  ;;  %s26_s12 = sshll.u32 %s214_s11, 4  ;;  %s17_s10 = int_to_ptr.vmem [resolvable:$true] %s16_s10  ;;  %s27_s12 = int_to_ptr.vmem [resolvable:$true] %s26_s12 }
   0x4   :  { %s141_s15 = scalar_lea.hbm %s270_s0, 64 }
   0x5   :  { %p142_p0 = scmp.ne.s32.totalorder %s270_s0, %s141_s15  ;;  %p145_p1 = scmp.lt.u32.totalorder %s141_s15, %s270_s0 }
   0x7   :  { %p147_p2 = pnand %p145_p1, %p142_p0 }
   0x9   :  { %150 = shalt.err (!%p147_p2)
}
   0xa   :  { %s151_s20 = scalar_lea.vmem %s17_s10, 64  ;;  %p156_p4 = scmp.lt.s32.totalorder %s17_s10, %s17_s10 }
   0xb   :  { %p152_p3 = scmp.ne.s32.totalorder %s17_s10, %s151_s20  ;;  %p157_p5 = scmp.lt.s32.totalorder %s151_s20, %s151_s20 }
   0xd   :  { %p158_p6 = por %p157_p5, %p156_p4 }
   0xf   :  { %p159_p7 = pnand %p158_p6, %p152_p3 }
  0x11   :  { %162 = shalt.err (!%p159_p7)
}
  0x12   :  { %19 = dma.hbm_to_vmem [thread:$0]  %s270_s0, 64, %s17_s10, [#allocation3]  }
  0x13   :  { %s163_s25 = scalar_lea.hbm %s271_s1, 256 }
  0x14   :  { %p164_p8 = scmp.ne.s32.totalorder %s271_s1, %s163_s25  ;;  %p167_p9 = scmp.lt.u32.totalorder %s163_s25, %s271_s1 }
  0x16   :  { %p169_p10 = pnand %p167_p9, %p164_p8 }
  0x18   :  { %172 = shalt.err (!%p169_p10)
}
  0x19   :  { %s173_s30 = scalar_lea.vmem %s27_s12, 256  ;;  %p178_p12 = scmp.lt.s32.totalorder %s27_s12, %s27_s12 }
  0x1a   :  { %p174_p11 = scmp.ne.s32.totalorder %s27_s12, %s173_s30  ;;  %p179_p13 = scmp.lt.s32.totalorder %s173_s30, %s173_s30 }
  0x1c   :  { %p180_p0 = por %p179_p13, %p178_p12 }
  0x1e   :  { %p181_p1 = pnand %p180_p0, %p174_p11 }
  0x20   :  { %184 = shalt.err (!%p181_p1)
}
  0x21   :  { %29 = dma.hbm_to_vmem [thread:$0]  %s271_s1, 256, %s27_s12, [#allocation6]  }
  0x22   :  { %207 = dma.done.wait [#allocation3], 64  }
  0x23   :  { %208 = vsyncadd [#allocation3], 4294967232 }
  0x24   :  { %209 = dma.done.wait [#allocation6], 256  }
  0x25   :  { %210 = vsyncadd [#allocation6], 4294967040  ;;  %v44_v0 = vlaneseq  ;;  %v215_v1 = vmov 1966171168   ;;  %v216_v5 = vmov 286326784   ;;  %s218_s1 = smov [#allocation7]  }
  0x26   :  { %v42_v2 = vunpack.c.l.s4 %v215_v1  ;;  %v68_v6 = vunpack.c.l.s4 %v216_v5  ;;  %v217_v7 = vmov 858989090   ;;  %v37_v10 = vld [vmem:[#allocation5] sm:$0x77]  ;;  %v38_v11 = vld [vmem:[#allocation5 + $0x8] sm:$0x77] }
  0x27   :  { %v45_v3 = vshrl.u32 %v44_v0, 7  ;;  %v75_v8 = vunpack.c.l.s4 %v217_v7  ;;  %v36_v17 = vld [vmem:[#allocation2] sm:$0xf]  ;;  %s125_s4 = sshll.u32 %s218_s1, 4  ;;  %vm116_vm1 = vcmp.lt.s32.totalorder %v44_v0, 512  ;;  %s126_s4 = int_to_ptr.vmem [resolvable:$true] %s125_s4 }
  0x28   :  { %v43_v4 = vunpack.c.0.s8 %v42_v2  ;;  %v69_v14 = vunpack.c.0.s8 %v68_v6  ;;  %s185_s5 = scalar_lea.vmem %s126_s4, 64  ;;  %p190_p3 = scmp.lt.s32.totalorder %s126_s4, %s126_s4 }
  0x29   :  { %v76_v15 = vunpack.c.0.s8 %v75_v8  ;;  %p186_p2 = scmp.ne.s32.totalorder %s126_s4, %s185_s5  ;;  %p191_p4 = scmp.lt.s32.totalorder %s185_s5, %s185_s5 }
  0x2a   :  { %v46_v9 = vsub.s32 %v43_v4, %v45_v3  ;;  %v72_v19 = vsub.s32 %v69_v14, %v45_v3 }
  0x2b   :  { %v79_v20 = vsub.s32 %v76_v15, %v45_v3  ;;  %p192_p5 = por %p191_p4, %p190_p3 }
  0x2c   :  { %v47_v12 = vrot.slane %v37_v10, %v46_v9  ;;  %v54_v13 = vrot.slane %v38_v11, %v46_v9 }
  0x2d   :  { %p193_p6 = pnand %p192_p5, %p186_p2 }
  0x2e   :  { %v55_v16 = vcombine.low %v47_v12, %v54_v13 }
  0x30   :  { %v62_v18 = vrot.slane %v55_v16, %v46_v9 }
  0x32   :  { %v64_v21 = vsub.f32 %v36_v17, %v62_v18  ;;  %v111_v29 = vcombine.high %v62_v18, %v62_v18 }
  0x34   :  { %v73_v22 = vrot.slane %v64_v21, %v72_v19  ;;  %v80_v23 = vrot.slane %v64_v21, %v79_v20  ;;  %vm65_vm0 = vcmp.ge.f32.partialorder %v64_v21, 0.0 }
  0x36   :  { %v83_v24 = vmul.f32 %v73_v22, %v37_v10  ;;  %v84_v25 = vmul.f32 %v80_v23, %v38_v11 }
  0x38   :  { %v93_v26 = vrot.slane %v83_v24, %v46_v9  ;;  %v100_v27 = vrot.slane %v84_v25, %v46_v9 }
  0x3a   :  { %v101_v28 = vcombine.high %v93_v26, %v100_v27 }
  0x3c   :  { %v108_v30 = vrot.slane %v101_v28, %v46_v9 }
  0x3e   :  { %v110_v31 = vsel %vm65_vm0, %v64_v21, %v108_v30 }
  0x3f   :  { %v113_v32 = vadd.f32 %v111_v29, %v110_v31 }
  0x41   :  { %118 = vst.msk [vmem:[#allocation7] sm:$0xf] %vm116_vm1, %v113_v32 }
  0x42   :  { %196 = shalt.err (!%p193_p6)
}
  0x43   :  { %s197_s8 = scalar_lea.hbm %s272_s2, 64 }
  0x44   :  { %p198_p7 = scmp.ne.s32.totalorder %s272_s2, %s197_s8  ;;  %p201_p8 = scmp.lt.u32.totalorder %s197_s8, %s272_s2 }
  0x46   :  { %p203_p9 = pnand %p201_p8, %p198_p7 }
  0x48   :  { %206 = shalt.err (!%p203_p9)
}
  0x49   :  { %128 = dma.vmem_to_hbm [thread:$0]  %s126_s4, 64, %s272_s2, [#allocation4]  }
  0x4a   :  { %211 = dma.done.wait [#allocation4], 64  }
  0x4b   :  { %212 = vsyncadd [#allocation4], 4294967232 }
  0x4c   :  { %132 = vsyncpa [#allocation3], 1 }
  0x4d   :  { %133 = vsyncpa [#allocation6], 1 }
  0x4e   :  { %134 = vsyncpa [#allocation4], 1 }

</bundles_post_ra>
